<compile_context>
chip_gen: v6e
topology: v6e:2x2x1
jax: 0.10.0
libtpu: 0.0.40
codegen_flags: <defaults>
</compile_context>

<pallas_src>
import functools
import math

import numpy as np
import jax
import jax.numpy as jnp
from jax.experimental import pallas as pl
from jax.experimental.pallas import tpu as pltpu


def _bigbird_head_kernel(x_ref, wq_ref, wk_ref, wv_ref, bias_ref, dbias_ref,
                         attn_ref, weights_ref):
    bps, T, H = attn_ref.shape           # batches this grid step, seq, head
    C = x_ref.shape[-1]

    # Projections: three separate matmuls (no lane-offset slices of a packed
    # result).  Wq already carries the 1/sqrt(embed_dim) scale.
    x2 = x_ref[...].reshape(bps * T, C)          # leading-dim merge: no-op
    q = jnp.dot(x2, wq_ref[...], preferred_element_type=jnp.float32)
    k = jnp.dot(x2, wk_ref[...], preferred_element_type=jnp.float32)
    v = jnp.dot(x2, wv_ref[...], preferred_element_type=jnp.float32)
    q = q.reshape(bps, T, H)                     # sublane split at T=32: no-op
    k = k.reshape(bps, T, H)
    v = v.reshape(bps, T, H)

    # einsum('btc,bTc->bTt'): logits[b, i, j] = k[b, i] . q[b, j]
    logits = jnp.einsum('bkh,bqh->bkq', k, q,
                        preferred_element_type=jnp.float32)      # (bps, T, T)
    logits = logits + bias_ref[...][None, :, :]  # additive mask: 0 / -1e30

    m = jnp.max(logits, axis=-1, keepdims=True)                  # (bps, T, 1)
    e = jnp.exp(logits - m)
    denom = jnp.sum(e, axis=-1, keepdims=True)
    r = pl.reciprocal(denom, approx=True)                        # EUP slot
    r = r * (2.0 - denom * r)        # one Newton step -> full f32 accuracy
    weights_ref[...] = e * r                                     # (bps, T, T)

    # einsum('btt,btc->btc', weights, v) == diag(weights)[:, :, None] * v.
    # Diagonal computed analytically: logits[b,t,t] = q[b,t].k[b,t] + bias[t,t].
    dlogit = jnp.sum(q * k, axis=-1, keepdims=True) + dbias_ref[...][None, :, :]
    attn_ref[...] = (jnp.exp(dlogit - m) * r) * v                # (bps, T, H)


def _num_tensorcores():
    """Best-effort TensorCores-per-chip (2 on v7x, 1 on v5e/v6e)."""
    try:
        info = pltpu.get_tpu_info()
    except Exception:
        return 1
    for name in ("num_cores", "core_count", "num_tensorcores",
                 "tensorcores_per_chip", "num_tensor_cores"):
        n = getattr(info, name, None)
        if isinstance(n, int) and n > 0:
            return n
    return 1


def prepare_bigbird_params(wq, wk, wv, mask, *, embed_dim):
    """Hoisted parameter prep: run ONCE when weights / mask are set.

    wq/wk/wv: (C, H) pre-transposed Linear weights (no bias).
    mask:     (T, T) 0/1 combined BigBird (x) causal mask.
    """
    inv_scale = 1.0 / (float(embed_dim) ** 0.5)
    wq_s = wq.astype(jnp.float32) * inv_scale       # fold 1/sqrt(C) into Wq
    bias = jnp.where(mask == 0, -1e30, 0.0).astype(jnp.float32)   # (T, T)
    dbias = jnp.diagonal(bias)[:, None].astype(jnp.float32)       # (T, 1)
    return (wq_s, wk.astype(jnp.float32), wv.astype(jnp.float32), bias, dbias)


@functools.partial(jax.jit, static_argnames=("batches_per_step",))
def bigbird_attention_head(x, wq_s, wk, wv, bias, dbias, *,
                           batches_per_step=None):
    """x: (B, T, C) f32; remaining arrays from prepare_bigbird_params()."""
    B, T, C = x.shape
    H = wq_s.shape[1]

    if batches_per_step is None:
        ntc = _num_tensorcores()
        # Whole batch in one grid step on single-TC chips (v5e/v6e); split
        # across TensorCores on v7x.  Cap at 8 batches/step so per-step vreg
        # live ranges and VMEM footprint stay bounded if B is scaled up
        # (v7x has only 64 MiB VMEM / 32 MiB default scoped limit).
        target = B if ntc <= 1 else max(1, B // ntc)
        target = min(target, 8)
        bps = max(d for d in range(1, target + 1) if B % d == 0)
    else:
        bps = batches_per_step
    assert B % bps == 0

    grid = (B // bps,)
    attn, weights = pl.pallas_call(
        _bigbird_head_kernel,
        out_shape=(jax.ShapeDtypeStruct((B, T, H), jnp.float32),   # attention
                   jax.ShapeDtypeStruct((B, T, T), jnp.float32)),  # weights
        grid_spec=pltpu.PrefetchScalarGridSpec(
            num_scalar_prefetch=0,
            grid=grid,
            in_specs=[
                pl.BlockSpec((bps, T, C), lambda g: (g, 0, 0)),   # x
                pl.BlockSpec((C, H), lambda g: (0, 0)),           # Wq * scale
                pl.BlockSpec((C, H), lambda g: (0, 0)),           # Wk
                pl.BlockSpec((C, H), lambda g: (0, 0)),           # Wv
                pl.BlockSpec((T, T), lambda g: (0, 0)),           # additive mask
                pl.BlockSpec((T, 1), lambda g: (0, 0)),           # mask diagonal
            ],
            out_specs=[
                pl.BlockSpec((bps, T, H), lambda g: (g, 0, 0)),
                pl.BlockSpec((bps, T, T), lambda g: (g, 0, 0)),
            ],
        ),
        compiler_params=pltpu.CompilerParams(
            dimension_semantics=("parallel",)),
    )(x, wq_s, wk, wv, bias, dbias)
    return attn, weights


def create_big_bird_mask(seed, block_size, num_global, num_local, num_random):
    # Host-side deterministic replication of the torch.randperm-based mask.
    # TODO(synk): numpy permutation, not bit-identical to torch.randperm.
    rng = np.random.RandomState(seed)
    mask = np.zeros((block_size, block_size), dtype=np.float32)
    mask[0, :] = 1.0
    mask[:, 0] = 1.0
    for i in range(block_size):
        start = max(0, i - num_local)
        end = min(block_size, i + num_local + 1)
        mask[i, start:end] = 1.0
        rand_idx = rng.permutation(block_size)[:num_random]
        mask[i, rand_idx] = 1.0
    return mask


def reference_forward(x, wq, wk, wv, mask, embed_dim):
    # Pure-JAX replica of the PyTorch forward (for correctness check).
    q = x @ wq
    k = x @ wk
    v = x @ wv
    logits = jnp.einsum('btc,bTc->bTt', q, k) / (embed_dim ** 0.5)
    logits = jnp.where(mask[None, :, :] == 0.0, -jnp.inf, logits)
    weights = jax.nn.softmax(logits, axis=-1)
    diag = jnp.diagonal(weights, axis1=1, axis2=2)          # (B, T)
    attention = diag[:, :, None] * v
    return attention, weights


if __name__ == "__main__":
    block_size = 32          # T must equal block_size (asserted in the module)
    embed_dim = 32
    head_dim = 16
    B = 2
    autoregression = True
    # TODO(synk): nn.Dropout has no in-kernel equivalent here; modeled as
    # eval-mode identity (equivalent to dropout p=0).

    key = jax.random.PRNGKey(0)
    kx, kq, kk, kv = jax.random.split(key, 4)

    x = jax.random.normal(kx, (B, block_size, embed_dim), dtype=jnp.float32)

    # Deterministic Linear weights (no bias), stored pre-transposed (C, H).
    bound = 1.0 / math.sqrt(embed_dim)
    wq = jax.random.uniform(kq, (embed_dim, head_dim), jnp.float32, -bound, bound)
    wk = jax.random.uniform(kk, (embed_dim, head_dim), jnp.float32, -bound, bound)
    wv = jax.random.uniform(kv, (embed_dim, head_dim), jnp.float32, -bound, bound)

    # BigBird mask + optional causal mask, combined into one 0/1 mask.
    bb_mask = create_big_bird_mask(0, block_size,
                                   num_global=1,
                                   num_local=block_size // 8,
                                   num_random=block_size // 16)
    combined = bb_mask
    if autoregression:
        combined = combined * np.tril(np.ones((block_size, block_size),
                                               dtype=np.float32))
    combined = jnp.asarray(combined)

    # Parameter prep hoisted out of the per-call path (runs once per weight set).
    params = prepare_bigbird_params(wq, wk, wv, combined, embed_dim=embed_dim)

    attention, weights = bigbird_attention_head(x, *params)
    attention = jax.block_until_ready(attention)
    weights = jax.block_until_ready(weights)

    attn_ref, w_ref = reference_forward(x, wq, wk, wv, combined, embed_dim)
    assert attention.shape == (B, block_size, head_dim)
    assert weights.shape == (B, block_size, block_size)
    np.testing.assert_allclose(np.asarray(weights), np.asarray(w_ref),
                               rtol=1e-5, atol=1e-5)
    np.testing.assert_allclose(np.asarray(attention), np.asarray(attn_ref),
                               rtol=1e-5, atol=1e-5)
    print("KERNEL_OK")
</pallas_src>

<mosaic_0001>
module attributes {stable_mosaic.version = 11 : i64} {
  func.func @_bigbird_head_kernel(%arg0: i32, %arg1: memref<2x32x32xf32, #tpu.memory_space<vmem>>, %arg2: memref<32x16xf32, #tpu.memory_space<vmem>>, %arg3: memref<32x16xf32, #tpu.memory_space<vmem>>, %arg4: memref<32x16xf32, #tpu.memory_space<vmem>>, %arg5: memref<32x32xf32, #tpu.memory_space<vmem>>, %arg6: memref<32x1xf32, #tpu.memory_space<vmem>>, %arg7: memref<2x32x16xf32, #tpu.memory_space<vmem>>, %arg8: memref<2x32x32xf32, #tpu.memory_space<vmem>>) attributes {dimension_semantics = [#tpu.dimension_semantics<parallel>], iteration_bounds = array<i64: 1>, scalar_prefetch = 0 : i64, scratch_operands = 0 : i64, tpu.core_type = #tpu.core_type<tc>, window_params = [{transform_indices = @transform_0, window_bounds = array<i64: 2, 32, 32>}, {pipeline_mode = #tpu.pipeline_mode<synchronous>, transform_indices = @transform_1, window_bounds = array<i64: 32, 16>}, {pipeline_mode = #tpu.pipeline_mode<synchronous>, transform_indices = @transform_2, window_bounds = array<i64: 32, 16>}, {pipeline_mode = #tpu.pipeline_mode<synchronous>, transform_indices = @transform_3, window_bounds = array<i64: 32, 16>}, {pipeline_mode = #tpu.pipeline_mode<synchronous>, transform_indices = @transform_4, window_bounds = array<i64: 32, 32>}, {pipeline_mode = #tpu.pipeline_mode<synchronous>, transform_indices = @transform_5, window_bounds = array<i64: 32, 1>}, {transform_indices = @transform_6, window_bounds = array<i64: 2, 32, 16>}, {transform_indices = @transform_7, window_bounds = array<i64: 2, 32, 32>}]} {
    %c0 = arith.constant 0 : index
    %c0_0 = arith.constant 0 : index
    %c0_1 = arith.constant 0 : index
    %0 = vector.load %arg1[%c0, %c0_0, %c0_1] : memref<2x32x32xf32, #tpu.memory_space<vmem>>, vector<2x32x32xf32>
    %1 = vector.shape_cast %0 : vector<2x32x32xf32> to vector<64x32xf32>
    %c0_2 = arith.constant 0 : index
    %c0_3 = arith.constant 0 : index
    %2 = vector.load %arg2[%c0_2, %c0_3] : memref<32x16xf32, #tpu.memory_space<vmem>>, vector<32x16xf32>
    %cst = arith.constant dense<0.000000e+00> : vector<64x16xf32>
    %3 = tpu.matmul %1, %2, %cst {dimension_numbers = #tpu.dot_dimension_numbers<[1], [0], [0], [1], [0, 0, 1, 1], [], []>} : vector<64x32xf32>, vector<32x16xf32>, vector<64x16xf32> -> vector<64x16xf32>
    %c0_4 = arith.constant 0 : index
    %c0_5 = arith.constant 0 : index
    %4 = vector.load %arg3[%c0_4, %c0_5] : memref<32x16xf32, #tpu.memory_space<vmem>>, vector<32x16xf32>
    %cst_6 = arith.constant dense<0.000000e+00> : vector<64x16xf32>
    %5 = tpu.matmul %1, %4, %cst_6 {dimension_numbers = #tpu.dot_dimension_numbers<[1], [0], [0], [1], [0, 0, 1, 1], [], []>} : vector<64x32xf32>, vector<32x16xf32>, vector<64x16xf32> -> vector<64x16xf32>
    %c0_7 = arith.constant 0 : index
    %c0_8 = arith.constant 0 : index
    %6 = vector.load %arg4[%c0_7, %c0_8] : memref<32x16xf32, #tpu.memory_space<vmem>>, vector<32x16xf32>
    %cst_9 = arith.constant dense<0.000000e+00> : vector<64x16xf32>
    %7 = tpu.matmul %1, %6, %cst_9 {dimension_numbers = #tpu.dot_dimension_numbers<[1], [0], [0], [1], [0, 0, 1, 1], [], []>} : vector<64x32xf32>, vector<32x16xf32>, vector<64x16xf32> -> vector<64x16xf32>
    %8 = vector.shape_cast %3 : vector<64x16xf32> to vector<2x32x16xf32>
    %9 = vector.shape_cast %5 : vector<64x16xf32> to vector<2x32x16xf32>
    %10 = vector.shape_cast %7 : vector<64x16xf32> to vector<2x32x16xf32>
    "tpu.trace_start"() <{level = 10 : i32, message = "bkh,bqh->bkq"}> : () -> ()
    %cst_10 = arith.constant dense<0.000000e+00> : vector<2x32x32xf32>
    %11 = tpu.matmul %9, %8, %cst_10 {dimension_numbers = #tpu.dot_dimension_numbers<[2], [2], [1], [1], [0, 0, 0, 1, 1, 1], [0], [0]>} : vector<2x32x16xf32>, vector<2x32x16xf32>, vector<2x32x32xf32> -> vector<2x32x32xf32>
    "tpu.trace_stop"() : () -> ()
    %c0_11 = arith.constant 0 : index
    %c0_12 = arith.constant 0 : index
    %12 = vector.load %arg5[%c0_11, %c0_12] : memref<32x32xf32, #tpu.memory_space<vmem>>, vector<32x32xf32>
    %13 = vector.shape_cast %12 : vector<32x32xf32> to vector<1x32x32xf32>
    %14 = vector.broadcast %13 : vector<1x32x32xf32> to vector<2x32x32xf32>
    %15 = arith.addf %11, %14 : vector<2x32x32xf32>
    %cst_13 = arith.constant dense<0xFF800000> : vector<2x32xf32>
    %16 = vector.multi_reduction <maximumf>, %15, %cst_13 [2] : vector<2x32x32xf32> to vector<2x32xf32>
    %17 = vector.shape_cast %16 : vector<2x32xf32> to vector<2x32x1xf32>
    %18 = vector.broadcast %17 : vector<2x32x1xf32> to vector<2x32x32xf32>
    %19 = arith.subf %15, %18 : vector<2x32x32xf32>
    %20 = math.exp %19 : vector<2x32x32xf32>
    %cst_14 = arith.constant dense<0.000000e+00> : vector<2x32xf32>
    %21 = vector.multi_reduction <add>, %20, %cst_14 [2] : vector<2x32x32xf32> to vector<2x32xf32>
    %22 = vector.shape_cast %21 : vector<2x32xf32> to vector<2x32x1xf32>
    %23 = tpu.reciprocal %22 {approx = true} : vector<2x32x1xf32> -> vector<2x32x1xf32>
    %24 = arith.mulf %22, %23 : vector<2x32x1xf32>
    %cst_15 = arith.constant 2.000000e+00 : f32
    %25 = vector.broadcast %cst_15 : f32 to vector<2x32x1xf32>
    %26 = arith.subf %25, %24 : vector<2x32x1xf32>
    %27 = arith.mulf %23, %26 : vector<2x32x1xf32>
    %28 = vector.broadcast %27 : vector<2x32x1xf32> to vector<2x32x32xf32>
    %29 = arith.mulf %20, %28 : vector<2x32x32xf32>
    %c0_16 = arith.constant 0 : index
    %c0_17 = arith.constant 0 : index
    %c0_18 = arith.constant 0 : index
    %30 = vector.load %arg8[%c0_16, %c0_17, %c0_18] : memref<2x32x32xf32, #tpu.memory_space<vmem>>, vector<2x32x32xf32>
    tpu.vector_store %arg8[%c0_16, %c0_17, %c0_18], %29 {strides = array<i32>} : memref<2x32x32xf32, #tpu.memory_space<vmem>>, vector<2x32x32xf32>,
    %31 = arith.mulf %8, %9 : vector<2x32x16xf32>
    %cst_19 = arith.constant dense<0.000000e+00> : vector<2x32xf32>
    %32 = vector.multi_reduction <add>, %31, %cst_19 [2] : vector<2x32x16xf32> to vector<2x32xf32>
    %33 = vector.shape_cast %32 : vector<2x32xf32> to vector<2x32x1xf32>
    %c0_20 = arith.constant 0 : index
    %c0_21 = arith.constant 0 : index
    %34 = vector.load %arg6[%c0_20, %c0_21] : memref<32x1xf32, #tpu.memory_space<vmem>>, vector<32x1xf32>
    %35 = vector.shape_cast %34 : vector<32x1xf32> to vector<1x32x1xf32>
    %36 = vector.broadcast %35 : vector<1x32x1xf32> to vector<2x32x1xf32>
    %37 = arith.addf %33, %36 : vector<2x32x1xf32>
    %38 = arith.subf %37, %17 : vector<2x32x1xf32>
    %39 = math.exp %38 : vector<2x32x1xf32>
    %40 = arith.mulf %39, %27 : vector<2x32x1xf32>
    %41 = vector.broadcast %40 : vector<2x32x1xf32> to vector<2x32x16xf32>
    %42 = arith.mulf %41, %10 : vector<2x32x16xf32>
    %c0_22 = arith.constant 0 : index
    %c0_23 = arith.constant 0 : index
    %c0_24 = arith.constant 0 : index
    %43 = vector.load %arg7[%c0_22, %c0_23, %c0_24] : memref<2x32x16xf32, #tpu.memory_space<vmem>>, vector<2x32x16xf32>
    tpu.vector_store %arg7[%c0_22, %c0_23, %c0_24], %42 {strides = array<i32>} : memref<2x32x16xf32, #tpu.memory_space<vmem>>, vector<2x32x16xf32>,
    return
  }
  func.func @transform_0(%arg0: i32) -> (i32, i32, i32) {
    %c0_i32 = arith.constant 0 : i32
    %c0_i32_0 = arith.constant 0 : i32
    %c0_i32_1 = arith.constant 0 : i32
    return %arg0, %c0_i32, %c0_i32_0 : i32, i32, i32
  }
  func.func @transform_1(%arg0: i32) -> (i32, i32) {
    %c0_i32 = arith.constant 0 : i32
    %c0_i32_0 = arith.constant 0 : i32
    %c0_i32_1 = arith.constant 0 : i32
    return %c0_i32, %c0_i32_0 : i32, i32
  }
  func.func @transform_2(%arg0: i32) -> (i32, i32) {
    %c0_i32 = arith.constant 0 : i32
    %c0_i32_0 = arith.constant 0 : i32
    %c0_i32_1 = arith.constant 0 : i32
    return %c0_i32, %c0_i32_0 : i32, i32
  }
  func.func @transform_3(%arg0: i32) -> (i32, i32) {
    %c0_i32 = arith.constant 0 : i32
    %c0_i32_0 = arith.constant 0 : i32
    %c0_i32_1 = arith.constant 0 : i32
    return %c0_i32, %c0_i32_0 : i32, i32
  }
  func.func @transform_4(%arg0: i32) -> (i32, i32) {
    %c0_i32 = arith.constant 0 : i32
    %c0_i32_0 = arith.constant 0 : i32
    %c0_i32_1 = arith.constant 0 : i32
    return %c0_i32, %c0_i32_0 : i32, i32
  }
  func.func @transform_5(%arg0: i32) -> (i32, i32) {
    %c0_i32 = arith.constant 0 : i32
    %c0_i32_0 = arith.constant 0 : i32
    %c0_i32_1 = arith.constant 0 : i32
    return %c0_i32, %c0_i32_0 : i32, i32
  }
  func.func @transform_6(%arg0: i32) -> (i32, i32, i32) {
    %c0_i32 = arith.constant 0 : i32
    %c0_i32_0 = arith.constant 0 : i32
    %c0_i32_1 = arith.constant 0 : i32
    return %arg0, %c0_i32, %c0_i32_0 : i32, i32, i32
  }
  func.func @transform_7(%arg0: i32) -> (i32, i32, i32) {
    %c0_i32 = arith.constant 0 : i32
    %c0_i32_0 = arith.constant 0 : i32
    %c0_i32_1 = arith.constant 0 : i32
    return %arg0, %c0_i32, %c0_i32_0 : i32, i32, i32
  }
}

</mosaic_0001>

<bundles_post_ra>
// kernel: bigbird_attention_head.1
= control target key start
LH: loop header
LB: loop body
LE: loop exit
PB: predicated region body
PF: predicated region fallthrough
CT: control target
= control target key end

     0   :  { %vm38_vm0 = vcmask 261120   ;;  %s1506_s0 = inlined_call_operand.vmem [shape: f32[2,32,32], index: 0, kind: input, shape index: {}]   ;;  %s1507_s1 = inlined_call_operand.vmem [shape: f32[32,16], index: 1, kind: input, shape index: {}]   ;;  %s1508_s2 = inlined_call_operand.vmem [shape: f32[32,16], index: 2, kind: input, shape index: {}]   ;;  %s1509_s3 = inlined_call_operand.vmem [shape: f32[32,16], index: 3, kind: input, shape index: {}]   ;;  %s1510_s4 = inlined_call_operand.vmem [shape: f32[32,32], index: 4, kind: input, shape index: {}]   ;;  %s1511_s5 = inlined_call_operand.vmem [shape: f32[32,1], index: 5, kind: input, shape index: {}]   ;;  %s1512_s6 = inlined_call_operand.vmem [shape: f32[2,32,16], index: 6, kind: output, shape index: {0}]   ;;  %s1513_s7 = inlined_call_operand.hbm [shape: f32[2,32,32], index: 7, kind: output, shape index: {1}]  }
   0x1   :  { %v37_v0 = vld [vmem:[%s1507_s1 + $0x18] sm:$0xff]  ;;  %v36_v1 = vld [vmem:[%s1507_s1 + $0x10] sm:$0xff]  ;;  %v35_v2 = vld [vmem:[%s1507_s1 + $0x8] sm:$0xff] }
   0x2   :  { %973 = vmatprep.subr.mxu0 %v37_v0  ;;  %1061 = vmatprep.subr.mxu1 %v37_v0  ;;  %v34_v3 = vld [vmem:[%s1507_s1] sm:$0xff] }
   0x3   :  { %974 = vmatpush3.msra.mxu0 %v37_v0  ;;  %1065 = vmatpush3.msra.mxu1 %v37_v0  ;;  %v26_v4 = vld [vmem:[%s1506_s0] sm:$0xff] }
   0x4   :  { %975 = vmatprep.subr.mxu0 %v36_v1  ;;  %1062 = vmatprep.subr.mxu1 %v36_v1  ;;  %v30_v5 = vld [vmem:[%s1506_s0 + $0x20] sm:$0xff] }
   0x5   :  { %976 = vmatpush3.msra.mxu0 %v36_v1  ;;  %1066 = vmatpush3.msra.mxu1 %v36_v1 }
   0x6   :  { %977 = vmatprep.subr.mxu0 %v35_v2  ;;  %1063 = vmatprep.subr.mxu1 %v35_v2 }
   0x7   :  { %978 = vmatpush3.msra.mxu0 %v35_v2  ;;  %1067 = vmatpush3.msra.mxu1 %v35_v2 }
   0x8   :  { %13 = vsyncpa [#allocation3], 0  ;;  %979 = vmatprep.subr.mxu0 %v34_v3  ;;  %1064 = vmatprep.subr.mxu1 %v34_v3  ;;  %v27_v6 = vld [vmem:[%s1506_s0 + $0x8] sm:$0xff]  ;;  %v171_v8 = vld [vmem:[%s1508_s2 + $0x18] sm:$0xff]  ;;  %vm390_vm1 = vcmask 130048  }
   0x9   :  { %v31_v7 = vld [vmem:[%s1506_s0 + $0x28] sm:$0xff]  ;;  %980 = vmatpush3.msra.mxu0 %v34_v3  ;;  %1068 = vmatpush3.msra.mxu1 %v34_v3  ;;  %v28_v9 = vld [vmem:[%s1506_s0 + $0x10] sm:$0xff]  ;;  %v280_v12 = vld [vmem:[%s1509_s3 + $0x18] sm:$0xff] }
   0xa   :  { %981 = vmatprep.mubr.msk.f32.mxu0 %vm38_vm0, %v26_v4  ;;  %987 = vmatprep.mubr.msk.f32.mxu1 %vm38_vm0, %v30_v5  ;;  %v32_v10 = vld [vmem:[%s1506_s0 + $0x30] sm:$0xff]  ;;  %v29_v13 = vld [vmem:[%s1506_s0 + $0x18] sm:$0xff]  ;;  %v169_v15 = vld [vmem:[%s1508_s2 + $0x8] sm:$0xff] }
   0xb   :  { %982 = vmatmul.mubr.msk.f32.vlgmr.msra.gmra.mxu0 %vm38_vm0, %v27_v6  ;;  %988 = vmatmul.mubr.msk.f32.vlgmr.msra.gmra.mxu1 %vm38_vm0, %v31_v7  ;;  %v170_v11 = vld [vmem:[%s1508_s2 + $0x10] sm:$0xff]  ;;  %v33_v14 = vld [vmem:[%s1506_s0 + $0x38] sm:$0xff]  ;;  %v168_v16 = vld [vmem:[%s1508_s2] sm:$0xff] }
   0xc   :  { %993 = vmatprep.subr.mxu1 %v171_v8  ;;  %984 = vmatprep.mubr.msk.f32.mxu0 %vm38_vm0, %v28_v9  ;;  %v279_v17 = vld [vmem:[%s1509_s3 + $0x10] sm:$0xff]  ;;  %v278_v18 = vld [vmem:[%s1509_s3 + $0x8] sm:$0xff]  ;;  %v277_v19 = vld [vmem:[%s1509_s3] sm:$0xff] }
   0xd   :  { %994 = vmatpush3.msra.mxu1 %v171_v8  ;;  %990 = vmatprep.mubr.msk.f32.mxu1 %vm38_vm0, %v32_v10  ;;  %v387_v51 = vld [vmem:[%s1510_s4 + $0x8] sm:$0xff]  ;;  %v386_v53 = vld [vmem:[%s1510_s4] sm:$0xff]  ;;  %v389_v58 = vld [vmem:[%s1510_s4 + $0x18] sm:$0xff] }
   0xe   :  { %995 = vmatprep.subr.mxu1 %v170_v11  ;;  %1013 = vmatprep.subr.mxu0 %v280_v12  ;;  %v388_v1 = vld [vmem:[%s1510_s4 + $0x10] sm:$0xff] }
   0xf   :  { %996 = vmatpush3.msra.mxu1 %v170_v11  ;;  %985 = vmatmul.mubr.msk.f32.gmra.mxu0 %vm38_vm0, %v29_v13 }
  0x10   :  { %991 = vmatmul.mubr.msk.f32.gmra.mxu1 %vm38_vm0, %v33_v14  ;;  %997 = vmatprep.subr.mxu1 %v169_v15 }
  0x11   :  { %998 = vmatpush3.msra.mxu1 %v169_v15  ;;  %1001 = vmatprep.mubr.msk.f32.mxu1 %vm38_vm0, %v26_v4 }
  0x12   :  { %999 = vmatprep.subr.mxu1 %v168_v16  ;;  %1014 = vmatpush3.msra.mxu0 %v280_v12 }
  0x13   :  { %1000 = vmatpush3.msra.mxu1 %v168_v16  ;;  %1015 = vmatprep.subr.mxu0 %v279_v17 }
  0x14   :  { %1002 = vmatmul.mubr.msk.f32.vlgmr.msra.gmra.mxu1 %vm38_vm0, %v27_v6  ;;  %1016 = vmatpush3.msra.mxu0 %v279_v17 }
  0x15   :  { %1004 = vmatprep.mubr.msk.f32.mxu1 %vm38_vm0, %v28_v9  ;;  %1021 = vmatprep.mubr.msk.f32.mxu0 %vm38_vm0, %v26_v4 }
  0x16   :  { %1017 = vmatprep.subr.mxu0 %v278_v18 }
  0x17   :  { %1018 = vmatpush3.msra.mxu0 %v278_v18 }
  0x18   :  { %1005 = vmatmul.mubr.msk.f32.gmra.mxu1 %vm38_vm0, %v29_v13  ;;  %1019 = vmatprep.subr.mxu0 %v277_v19 }
  0x19   :  { %1007 = vmatprep.mubr.msk.f32.mxu1 %vm38_vm0, %v30_v5  ;;  %1020 = vmatpush3.msra.mxu0 %v277_v19 }
  0x1a   :  { %1022 = vmatmul.mubr.msk.f32.vlgmr.msra.gmra.mxu0 %vm38_vm0, %v27_v6 }
  0x1b   :  { %1024 = vmatprep.mubr.msk.f32.mxu0 %vm38_vm0, %v28_v9 }
  0x1c   :  { %1008 = vmatmul.mubr.msk.f32.gmra.mxu1 %vm38_vm0, %v31_v7 }
  0x1d   :  { %1010 = vmatprep.mubr.msk.f32.mxu1 %vm38_vm0, %v32_v10 }
  0x1e   :  { %1025 = vmatmul.mubr.msk.f32.gmra.mxu0 %vm38_vm0, %v29_v13 }
  0x1f   :  { %1027 = vmatprep.mubr.msk.f32.mxu0 %vm38_vm0, %v30_v5 }
  0x20   :  { %1011 = vmatmul.mubr.msk.f32.gmra.mxu1 %vm38_vm0, %v33_v14 }
  0x22   :  { %1028 = vmatmul.mubr.msk.f32.gmra.mxu0 %vm38_vm0, %v31_v7 }
  0x23   :  { %1030 = vmatprep.mubr.msk.f32.mxu0 %vm38_vm0, %v32_v10 }
  0x26   :  { %1031 = vmatmul.mubr.msk.f32.gmra.mxu0 %vm38_vm0, %v33_v14 }
  0xcb   :  { %v983_v20 = vpop.f32.mrf.mxu0  ;;  %v989_v21 = vpop.f32.mrf.mxu1 }
  0xcd   :  { %v129_v22 = vpop.f32.mrf.mxu0  ;;  %v149_v23 = vpop.f32.mrf.mxu1 }
  0xcf   :  { %v986_v24 = vpop.f32.mrf.mxu0 }
  0xd0   :  { %v992_v25 = vpop.f32.mrf.mxu1  ;;  %1033 = vmatprep.subr.msk.mxu1 %vm390_vm1, %v986_v24 }
  0xd1   :  { %1047 = vmatprep.subr.msk.mxu0 %vm390_vm1, %v992_v25  ;;  %v139_v26 = vpop.f32.mrf.mxu0  ;;  %1034 = vmatpush3.xpose.msk.msra.mxu1 %vm390_vm1, %v986_v24 }
  0xd2   :  { %v1276_v27 = vpop.f32.mrf.mxu1  ;;  %1048 = vmatpush3.xpose.msk.msra.mxu0 %vm390_vm1, %v992_v25  ;;  %1035 = vmatprep.subr.msk.mxu1 %vm390_vm1, %v139_v26 }
  0xd3   :  { %1049 = vmatprep.subr.msk.mxu0 %vm390_vm1, %v1276_v27 }
  0xd4   :  { %v1003_v28 = vpop.f32.mrf.mxu1 }
  0xd5   :  { %v1282_v29 = vmul.f32 %v1003_v28, %v983_v20  ;;  %1036 = vmatpush3.xpose.msk.msra.mxu1 %vm390_vm1, %v139_v26 }
  0xd6   :  { %v238_v30 = vpop.f32.mrf.mxu1  ;;  %1050 = vmatpush3.xpose.msk.msra.mxu0 %vm390_vm1, %v1276_v27  ;;  %1037 = vmatprep.subr.msk.mxu1 %vm390_vm1, %v983_v20 }
  0xd7   :  { %v1288_v31 = vmul.f32 %v238_v30, %v129_v22  ;;  %1051 = vmatprep.subr.msk.mxu0 %vm390_vm1, %v989_v21  ;;  %1041 = vmatprep.mubr.msk.f32.mxu1 %vm390_vm1, %v238_v30  ;;  %v740_v16 = vsel %vm390_vm1, %v1282_v29, 0.0 }
  0xd8   :  { %v1006_v32 = vpop.f32.mrf.mxu1 }
  0xd9   :  { %v1292_v33 = vmul.f32 %v1006_v32, %v986_v24  ;;  %1038 = vmatpush3.xpose.msk.msra.mxu1 %vm390_vm1, %v983_v20  ;;  %v737_v15 = vsel %vm390_vm1, %v1288_v31, 0.0 }
  0xda   :  { %v248_v34 = vpop.f32.mrf.mxu1  ;;  %1052 = vmatpush3.xpose.msk.msra.mxu0 %vm390_vm1, %v989_v21  ;;  %1039 = vmatprep.subr.msk.mxu1 %vm390_vm1, %v129_v22  ;;  %v1318_v43 = vpop.f32.mrf.mxu0 }
  0xdb   :  { %v1297_v35 = vmul.f32 %v248_v34, %v139_v26  ;;  %1053 = vmatprep.subr.msk.mxu0 %vm390_vm1, %v149_v23  ;;  %v746_v18 = vsel %vm390_vm1, %v1292_v33, 0.0 }
  0xdc   :  { %v1009_v36 = vpop.f32.mrf.mxu1  ;;  %v1320_v44 = vpop.f32.mrf.mxu0 }
  0xdd   :  { %v1300_v37 = vmul.f32 %v1009_v36, %v989_v21  ;;  %1040 = vmatpush3.xpose.msk.msra.mxu1 %vm390_vm1, %v129_v22  ;;  %v743_v17 = vsel %vm390_vm1, %v1297_v35, 0.0 }
  0xde   :  { %v258_v38 = vpop.f32.mrf.mxu1  ;;  %1054 = vmatpush3.xpose.msk.msra.mxu0 %vm390_vm1, %v149_v23  ;;  %v1322_v45 = vpop.f32.mrf.mxu0 }
  0xdf   :  { %v1304_v39 = vmul.f32 %v258_v38, %v149_v23  ;;  %1055 = vmatprep.mubr.msk.f32.mxu0 %vm390_vm1, %v258_v38  ;;  %v752_v20 = vsel %vm390_vm1, %v1300_v37, 0.0 }
  0xe0   :  { %v1012_v40 = vpop.f32.mrf.mxu1  ;;  %1042 = vmatmul.mubr.msk.f32.vlgmr.msra.gmra.mxu1 %vm390_vm1, %v1003_v28  ;;  %v1324_v46 = vpop.f32.mrf.mxu0 }
  0xe1   :  { %v1308_v41 = vmul.f32 %v1012_v40, %v992_v25  ;;  %1056 = vmatmul.mubr.msk.f32.vlgmr.msra.gmra.mxu0 %vm390_vm1, %v1009_v36  ;;  %1044 = vmatprep.mubr.msk.f32.mxu1 %vm390_vm1, %v248_v34  ;;  %v749_v19 = vsel %vm390_vm1, %v1304_v39, 0.0 }
  0xe2   :  { %v1312_v42 = vpop.f32.mrf.mxu1  ;;  %v1326_v47 = vpop.f32.mrf.mxu0 }
  0xe3   :  { %1058 = vmatprep.mubr.msk.f32.mxu0 %vm390_vm1, %v1312_v42 }
  0xe4   :  { %1045 = vmatmul.mubr.msk.f32.gmra.mxu1 %vm390_vm1, %v1006_v32  ;;  %v1328_v48 = vpop.f32.mrf.mxu0 }
  0xe5   :  { %1059 = vmatmul.mubr.msk.f32.gmra.mxu0 %vm390_vm1, %v1012_v40 }
  0xe6   :  { %v1330_v49 = vpop.f32.mrf.mxu0 }
  0xe8   :  { %v1332_v50 = vpop.f32.mrf.mxu0 }
 0x1a0   :  { %v1043_v52 = vpop.f32.mrf.mxu1 }
 0x1a1   :  { %v487_v54 = vadd.f32 %v1043_v52, %v387_v51  ;;  %v1057_v55 = vpop.f32.mrf.mxu0 }
 0x1a2   :  { %v596_v56 = vadd.f32 %v1057_v55, %v387_v51  ;;  %v481_v57 = vpop.f32.mrf.mxu1 }
 0x1a3   :  { %v482_v59 = vadd.f32 %v481_v57, %v386_v53  ;;  %v590_v60 = vpop.f32.mrf.mxu0  ;;  %v612_v61 = vsel %vm38_vm0, %v487_v54, -inf }
 0x1a4   :  { %613 = vmax.xlane.f32.xlu0 %v612_v61  ;;  %v1046_v62 = vpop.f32.mrf.mxu1  ;;  %v624_v63 = vsel %vm38_vm0, %v596_v56, -inf  ;;  %v591_v4 = vadd.f32 %v590_v60, %v386_v53 }
 0x1a5   :  { %v497_v0 = vadd.f32 %v1046_v62, %v389_v58  ;;  %625 = vmax.xlane.f32.xlu1 %v624_v63  ;;  %v1060_v2 = vpop.f32.mrf.mxu0  ;;  %v609_v5 = vsel %vm38_vm0, %v482_v59, -inf }
 0x1a6   :  { %v491_v3 = vpop.f32.mrf.mxu1  ;;  %v606_v10 = vadd.f32 %v1060_v2, %v389_v58  ;;  %v621_v11 = vsel %vm38_vm0, %v591_v4, -inf }
 0x1a7   :  { %v618_v6 = vsel %vm38_vm0, %v497_v0, -inf  ;;  %v600_v7 = vpop.f32.mrf.mxu0  ;;  %v492_v8 = vadd.f32 %v491_v3, %v388_v1 }
 0x1a8   :  { %610 = vmax.xlane.f32.xlu0 %v609_v5  ;;  %v601_v9 = vadd.f32 %v600_v7, %v388_v1  ;;  %v630_v14 = vsel %vm38_vm0, %v606_v10, -inf  ;;  %v735_v7 = vmul.f32 %v1312_v42, %v1276_v27  ;;  %v762_v27 = vld [vmem:[%s1511_s5 + $0x8] sm:$0xff] }
 0x1a9   :  { %619 = vmax.xlane.f32.xlu1 %v618_v6  ;;  %v615_v12 = vsel %vm38_vm0, %v492_v8, -inf }
 0x1aa   :  { %v627_v13 = vsel %vm38_vm0, %v601_v9, -inf }
 0x1ac   :  { %622 = vmax.xlane.f32.xlu0 %v621_v11  ;;  %v1145_v11 = vmov 0  }
 0x1ad   :  { %616 = vmax.xlane.f32.xlu1 %v615_v12  ;;  %1073 = vset.pattern.permute.xlu0 %v1145_v11 }
 0x1ae   :  { %1074 = vset.pattern.permute.xlu1 %v1145_v11 }
 0x1b0   :  { %628 = vmax.xlane.f32.xlu0 %v627_v13 }
 0x1b1   :  { %631 = vmax.xlane.f32.xlu1 %v630_v14 }
 0x1b4   :  { %738 = vadd.xlane.f32.xlu0 %v737_v15 }
 0x1b5   :  { %741 = vadd.xlane.f32.xlu1 %v740_v16 }
 0x1b8   :  { %744 = vadd.xlane.f32.xlu0 %v743_v17 }
 0x1b9   :  { %747 = vadd.xlane.f32.xlu1 %v746_v18 }
 0x1bc   :  { %750 = vadd.xlane.f32.xlu0 %v749_v19 }
 0x1bd   :  { %753 = vadd.xlane.f32.xlu1 %v752_v20 }
 0x22d   :  { %v1366_v21 = vpop.xlane.xlu0 %613 }
 0x22e   :  { %v634_v22 = vsub.f32 %v487_v54, %v1366_v21  ;;  %v1369_v23 = vpop.xlane.xlu1 %625 }
 0x22f   :  { %v638_v24 = vsub.f32 %v596_v56, %v1369_v23 }
 0x230   :  { %v643_v25 = vmul.f32 1.442695, %v634_v22 }
 0x231   :  { %v651_v26 = vmul.f32 1.442695, %v638_v24  ;;  %v1372_v28 = vpop.xlane.xlu0 %610 }
 0x232   :  { %1075 = vpow2.f32 %v643_v25  ;;  %v633_v29 = vsub.f32 %v482_v59, %v1372_v28  ;;  %v1375_v30 = vpop.xlane.xlu1 %619 }
 0x233   :  { %v636_v31 = vsub.f32 %v497_v0, %v1375_v30  ;;  %1077 = vpow2.f32 %v651_v26 }
 0x234   :  { %v641_v32 = vmul.f32 1.442695, %v633_v29 }
 0x235   :  { %v647_v33 = vmul.f32 1.442695, %v636_v31  ;;  %v1378_v34 = vpop.xlane.xlu0 %622 }
 0x236   :  { %1079 = vpow2.f32 %v641_v32  ;;  %v1380_v35 = vpop.xlane.xlu1 %616  ;;  %v637_v36 = vsub.f32 %v591_v4, %v1378_v34 }
 0x237   :  { %v635_v37 = vsub.f32 %v492_v8, %v1380_v35  ;;  %1081 = vpow2.f32 %v647_v33  ;;  %v764_v33 = vld [vmem:[%s1511_s5 + $0x18] sm:$0xff] }
 0x238   :  { %v649_v38 = vmul.f32 1.442695, %v637_v36 }
 0x239   :  { %v645_v39 = vmul.f32 1.442695, %v635_v37  ;;  %v1384_v40 = vpop.xlane.xlu0 %628 }
 0x23a   :  { %1083 = vpow2.f32 %v649_v38  ;;  %v1386_v51 = vpop.xlane.xlu1 %631  ;;  %v639_v52 = vsub.f32 %v601_v9, %v1384_v40  ;;  %v758_v9 = vsel %vm390_vm1, %v1308_v41, 0.0  ;;  %v761_v41 = vld [vmem:[%s1511_s5] sm:$0xff] }
 0x23b   :  { %v640_v53 = vsub.f32 %v606_v10, %v1386_v51  ;;  %1085 = vpow2.f32 %v645_v39  ;;  %v755_v10 = vsel %vm390_vm1, %v735_v7, 0.0 }
 0x23c   :  { %v653_v54 = vmul.f32 1.442695, %v639_v52 }
 0x23d   :  { %v655_v55 = vmul.f32 1.442695, %v640_v53  ;;  %v739_v13 = vpop.xlane.xlu0 %738 }
 0x23e   :  { %v742_v12 = vpop.xlane.xlu1 %741  ;;  %v765_v19 = vadd.f32 %v761_v41, %v739_v13 }
 0x23f   :  { %v1390_v56 = vpop.eup %1075  ;;  %1087 = vpow2.f32 %v655_v55  ;;  %v766_v15 = vadd.f32 %v762_v27, %v742_v12 }
 0x240   :  { %1089 = vpow2.f32 %v653_v54  ;;  %v660_v57 = vsel %vm38_vm0, %v1390_v56, 0.0  ;;  %v1394_v58 = vpop.eup %1077  ;;  %v773_v26 = vsub.f32 %v765_v19, %v1372_v28 }
 0x241   :  { %661 = vadd.xlane.f32.xlu1 %v660_v57  ;;  %v672_v60 = vsel %vm38_vm0, %v1394_v58, 0.0  ;;  %v745_v42 = vpop.xlane.xlu0 %744  ;;  %v774_v17 = vsub.f32 %v766_v15, %v1366_v21 }
 0x242   :  { %v748_v14 = vpop.xlane.xlu1 %747  ;;  %v781_v36 = vmul.f32 1.442695, %v773_v26 }
 0x243   :  { %v1396_v59 = vpop.eup %1079  ;;  %v783_v24 = vmul.f32 1.442695, %v774_v17  ;;  %v768_v37 = vadd.f32 %v764_v33, %v748_v14 }
 0x244   :  { %v657_v61 = vsel %vm38_vm0, %v1396_v59, 0.0  ;;  %v1402_v62 = vpop.eup %1081 }
 0x245   :  { %673 = vadd.xlane.f32.xlu1 %v672_v60  ;;  %658 = vadd.xlane.f32.xlu0 %v657_v61  ;;  %v666_v0 = vsel %vm38_vm0, %v1402_v62, 0.0  ;;  %v751_v20 = vpop.xlane.xlu0 %750  ;;  %v776_v28 = vsub.f32 %v768_v37, %v1375_v30 }
 0x246   :  { %v754_v16 = vpop.xlane.xlu1 %753  ;;  %v769_v29 = vadd.f32 %v761_v41, %v751_v20 }
 0x247   :  { %v1404_v63 = vpop.eup %1083  ;;  %v770_v18 = vadd.f32 %v762_v27, %v754_v16  ;;  %v787_v61 = vmul.f32 1.442695, %v776_v28 }
 0x248   :  { %v669_v1 = vsel %vm38_vm0, %v1404_v63, 0.0  ;;  %v1410_v2 = vpop.eup %1085  ;;  %v777_v38 = vsub.f32 %v769_v29, %v1378_v34 }
 0x249   :  { %667 = vadd.xlane.f32.xlu1 %v666_v0  ;;  %670 = vadd.xlane.f32.xlu0 %v669_v1  ;;  %v663_v4 = vsel %vm38_vm0, %v1410_v2, 0.0  ;;  %v778_v25 = vsub.f32 %v770_v18, %v1369_v23  ;;  %v763_v23 = vld [vmem:[%s1511_s5 + $0x10] sm:$0xff]  ;;  %s1146_s5 = smov [#allocation2]  }
 0x24a   :  { %v767_v53 = vadd.f32 %v763_v23, %v745_v42  ;;  %v789_v54 = vmul.f32 1.442695, %v777_v38  ;;  %s868_s28 = sshll.u32 %s1146_s5, 4  ;;  %s869_s28 = int_to_ptr.vmem [resolvable:$true] %s868_s28 }
 0x24b   :  { %v791_v21 = vmul.f32 1.442695, %v778_v25  ;;  %s1123_s29 = scalar_lea.vmem %s869_s28, 1024  ;;  %p1128_p1 = scmp.lt.s32.totalorder %s869_s28, %s869_s28 }
 0x24c   :  { %v1412_v3 = vpop.eup %1087  ;;  %v775_v0 = vsub.f32 %v767_v53, %v1380_v35  ;;  %p1124_p0 = scmp.ne.s32.totalorder %s869_s28, %s1123_s29  ;;  %p1129_p2 = scmp.lt.s32.totalorder %s1123_s29, %s1123_s29 }
 0x24d   :  { %v1416_v5 = vpop.eup %1089  ;;  %v678_v6 = vsel %vm38_vm0, %v1412_v3, 0.0  ;;  %664 = vadd.xlane.f32.xlu0 %v663_v4 }
 0x24e   :  { %679 = vadd.xlane.f32.xlu1 %v678_v6  ;;  %v675_v8 = vsel %vm38_vm0, %v1416_v5, 0.0  ;;  %v785_v12 = vmul.f32 1.442695, %v775_v0  ;;  %p1130_p3 = por %p1129_p2, %p1128_p1 }
 0x250   :  { %p1131_p4 = pnand %p1130_p3, %p1124_p0 }
 0x251   :  { %676 = vadd.xlane.f32.xlu0 %v675_v8 }
 0x252   :  { %759 = vadd.xlane.f32.xlu1 %v758_v9 }
 0x255   :  { %756 = vadd.xlane.f32.xlu0 %v755_v10 }
 0x2ca   :  { %v662_v22 = vpop.xlane.xlu1 %661 }
 0x2cb   :  { %1091 = vrcp.f32 %v662_v22 }
 0x2ce   :  { %v674_v31 = vpop.xlane.xlu1 %673  ;;  %v659_v32 = vpop.xlane.xlu0 %658 }
 0x2cf   :  { %1093 = vrcp.f32 %v674_v31 }
 0x2d0   :  { %1095 = vrcp.f32 %v659_v32 }
 0x2d1   :  { %1097 = vpow2.f32 %v783_v24 }
 0x2d2   :  { %v668_v39 = vpop.xlane.xlu1 %667  ;;  %v671_v52 = vpop.xlane.xlu0 %670 }
 0x2d3   :  { %1099 = vrcp.f32 %v668_v39 }
 0x2d4   :  { %1101 = vrcp.f32 %v671_v52 }
 0x2d5   :  { %1103 = vpow2.f32 %v791_v21 }
 0x2d6   :  { %1105 = vpow2.f32 %v781_v36  ;;  %v665_v55 = vpop.xlane.xlu0 %664 }
 0x2d7   :  { %v680_v57 = vpop.xlane.xlu1 %679  ;;  %1107 = vrcp.f32 %v665_v55 }
 0x2d8   :  { %v1092_v60 = vpop.eup %1091  ;;  %1109 = vrcp.f32 %v680_v57 }
 0x2d9   :  { %v690_v34 = vmul.f32 %v1092_v60, %v662_v22  ;;  %1111 = vpow2.f32 %v789_v54 }
 0x2da   :  { %v677_v1 = vpop.xlane.xlu0 %676 }
 0x2db   :  { %v698_v4 = vsub.f32 2.0, %v690_v34  ;;  %v760_v6 = vpop.xlane.xlu1 %759  ;;  %1113 = vrcp.f32 %v677_v1 }
 0x2dc   :  { %v1094_v7 = vpop.eup %1093  ;;  %v772_v8 = vadd.f32 %v764_v33, %v760_v6  ;;  %1115 = vpow2.f32 %v787_v61 }
 0x2dd   :  { %v1096_v9 = vpop.eup %1095  ;;  %v706_v30 = vmul.f32 %v1092_v60, %v698_v4  ;;  %v694_v10 = vmul.f32 %v1094_v7, %v674_v31  ;;  %1117 = vpow2.f32 %v785_v12 }
 0x2de   :  { %v1098_v11 = vpop.eup %1097  ;;  %v689_v13 = vmul.f32 %v1096_v9, %v659_v32  ;;  %v757_v14 = vpop.xlane.xlu0 %756  ;;  %v780_v17 = vsub.f32 %v772_v8, %v1386_v51 }
 0x2df   :  { %v714_v27 = vmul.f32 %v1390_v56, %v706_v30  ;;  %v702_v42 = vsub.f32 2.0, %v694_v10  ;;  %v771_v15 = vadd.f32 %v763_v23, %v757_v14  ;;  %v798_v35 = vmul.f32 %v1098_v11, %v706_v30 }
 0x2e0   :  { %v1100_v16 = vpop.eup %1099  ;;  %v697_v41 = vsub.f32 2.0, %v689_v13  ;;  %v795_v37 = vmul.f32 1.442695, %v780_v17 }
 0x2e1   :  { %v1102_v18 = vpop.eup %1101  ;;  %722 = vst.msk [vmem:[#allocation2 + $0x8] sm:$0xff] %vm38_vm0, %v714_v27  ;;  %v710_v19 = vmul.f32 %v1094_v7, %v702_v42  ;;  %v692_v20 = vmul.f32 %v1100_v16, %v668_v39  ;;  %v779_v22 = vsub.f32 %v771_v15, %v1384_v40  ;;  %812 = vperm.xlu1 %1074, %v798_v35  }
 0x2e2   :  { %v1104_v24 = vpop.eup %1103  ;;  %v705_v25 = vmul.f32 %v1096_v9, %v697_v41  ;;  %v693_v26 = vmul.f32 %v1102_v18, %v671_v52 }
 0x2e3   :  { %v1106_v56 = vpop.eup %1105  ;;  %v718_v29 = vmul.f32 %v1394_v58, %v710_v19  ;;  %v700_v31 = vsub.f32 2.0, %v692_v20  ;;  %v793_v32 = vmul.f32 1.442695, %v779_v22  ;;  %v802_v33 = vmul.f32 %v1104_v24, %v710_v19 }
 0x2e4   :  { %v1108_v21 = vpop.eup %1107  ;;  %v713_v51 = vmul.f32 %v1396_v59, %v705_v25  ;;  %v701_v36 = vsub.f32 2.0, %v693_v26  ;;  %v797_v38 = vmul.f32 %v1106_v56, %v705_v25 }
 0x2e5   :  { %v1110_v39 = vpop.eup %1109  ;;  %726 = vst.msk [vmem:[#allocation2 + $0x28] sm:$0xff] %vm38_vm0, %v718_v29  ;;  %v708_v40 = vmul.f32 %v1100_v16, %v700_v31  ;;  %v691_v23 = vmul.f32 %v1108_v21, %v665_v55  ;;  %1119 = vpow2.f32 %v793_v32  ;;  %832 = vperm.xlu1 %1074, %v802_v33  }
 0x2e6   :  { %721 = vst.msk [vmem:[#allocation2] sm:$0xff] %vm38_vm0, %v713_v51  ;;  %v709_v52 = vmul.f32 %v1102_v18, %v701_v36  ;;  %v696_v58 = vmul.f32 %v1110_v39, %v680_v57  ;;  %807 = vperm.xlu0 %1073, %v797_v38   ;;  %v1112_v28 = vpop.eup %1111  ;;  %1121 = vpow2.f32 %v795_v37 }
 0x2e7   :  { %v716_v53 = vmul.f32 %v1402_v62, %v708_v40  ;;  %v699_v54 = vsub.f32 2.0, %v691_v23 }
 0x2e8   :  { %v1114_v59 = vpop.eup %1113  ;;  %v717_v60 = vmul.f32 %v1404_v63, %v709_v52  ;;  %v704_v34 = vsub.f32 2.0, %v696_v58  ;;  %v801_v61 = vmul.f32 %v1112_v28, %v709_v52 }
 0x2e9   :  { %724 = vst.msk [vmem:[#allocation2 + $0x18] sm:$0xff] %vm38_vm0, %v716_v53  ;;  %v707_v55 = vmul.f32 %v1108_v21, %v699_v54  ;;  %v695_v0 = vmul.f32 %v1114_v59, %v677_v1  ;;  %v1116_v57 = vpop.eup %1115 }
 0x2ea   :  { %725 = vst.msk [vmem:[#allocation2 + $0x20] sm:$0xff] %vm38_vm0, %v717_v60  ;;  %v712_v4 = vmul.f32 %v1110_v39, %v704_v34  ;;  %827 = vperm.xlu1 %1074, %v801_v61   ;;  %v800_v8 = vmul.f32 %v1116_v57, %v708_v40  ;;  %v1118_v9 = vpop.eup %1117 }
 0x2eb   :  { %v715_v6 = vmul.f32 %v1410_v2, %v707_v55  ;;  %v703_v7 = vsub.f32 2.0, %v695_v0  ;;  %v799_v30 = vmul.f32 %v1118_v9, %v707_v55 }
 0x2ec   :  { %v720_v62 = vmul.f32 %v1412_v3, %v712_v4 }
 0x2ed   :  { %723 = vst.msk [vmem:[#allocation2 + $0x10] sm:$0xff] %vm38_vm0, %v715_v6  ;;  %v711_v63 = vmul.f32 %v1114_v59, %v703_v7 }
 0x2ee   :  { %728 = vst.msk [vmem:[#allocation2 + $0x38] sm:$0xff] %vm38_vm0, %v720_v62  ;;  %822 = vperm.xlu1 %1074, %v800_v8  }
 0x2ef   :  { %v719_v1 = vmul.f32 %v1416_v5, %v711_v63 }
 0x2f1   :  { %727 = vst.msk [vmem:[#allocation2 + $0x30] sm:$0xff] %vm38_vm0, %v719_v1 }
 0x2f2   :  { %v1120_v10 = vpop.eup %1119  ;;  %817 = vperm.xlu1 %1074, %v799_v30  }
 0x2f3   :  { %v803_v11 = vmul.f32 %v1120_v10, %v711_v63  ;;  %v1122_v2 = vpop.eup %1121 }
 0x2f4   :  { %v804_v3 = vmul.f32 %v1122_v2, %v712_v4 }
 0x2f6   :  { %837 = vperm.xlu1 %1074, %v803_v11  }
 0x2f7   :  { %1134 = shalt.err (!%p1131_p4)
}
 0x2f8   :  { %s1147_s30 = smov 128   ;;  %s1148_s8 = smov 8  }
 0x2f9   :  { %874 = dma.vmem_to_hbm [thread:$0]  %s869_s28, 1024, %s1513_s7, [#allocation3], %s1147_s30, %s1147_s30, %s1148_s8  }
 0x2fa   :  { %842 = vperm.xlu1 %1074, %v804_v3  }
 0x35c   :  { %v813_v5 = vpop.permute.xlu1 %812 }
 0x35d   :  { %v846_v12 = vmul.f32 %v1318_v43, %v813_v5 }
 0x35f   :  { %854 = vst.msk [vmem:[%s1512_s6 + $0x8] sm:$0xff] %vm390_vm1, %v846_v12 }
 0x360   :  { %v833_v13 = vpop.permute.xlu1 %832 }
 0x361   :  { %v850_v14 = vmul.f32 %v1326_v47, %v833_v13  ;;  %v808_v27 = vpop.permute.xlu0 %807 }
 0x362   :  { %v845_v42 = vmul.f32 %v808_v27, %v1320_v44 }
 0x363   :  { %858 = vst.msk [vmem:[%s1512_s6 + $0x28] sm:$0xff] %vm390_vm1, %v850_v14 }
 0x364   :  { %853 = vst.msk [vmem:[%s1512_s6] sm:$0xff] %vm390_vm1, %v845_v42 }
 0x365   :  { %v828_v43 = vpop.permute.xlu1 %827 }
 0x366   :  { %v849_v15 = vmul.f32 %v828_v43, %v1328_v48 }
 0x368   :  { %857 = vst.msk [vmem:[%s1512_s6 + $0x20] sm:$0xff] %vm390_vm1, %v849_v15 }
 0x369   :  { %v823_v47 = vpop.permute.xlu1 %822 }
 0x36a   :  { %v848_v44 = vmul.f32 %v1322_v45, %v823_v47 }
 0x36c   :  { %856 = vst.msk [vmem:[%s1512_s6 + $0x18] sm:$0xff] %vm390_vm1, %v848_v44 }
 0x36d   :  { %v818_v35 = vpop.permute.xlu1 %817 }
 0x36e   :  { %v847_v16 = vmul.f32 %v818_v35, %v1324_v46 }
 0x370   :  { %855 = vst.msk [vmem:[%s1512_s6 + $0x10] sm:$0xff] %vm390_vm1, %v847_v16 }
 0x371   :  { %v838_v48 = vpop.permute.xlu1 %837 }
 0x372   :  { %v851_v41 = vmul.f32 %v838_v48, %v1332_v50 }
 0x374   :  { %859 = vst.msk [vmem:[%s1512_s6 + $0x30] sm:$0xff] %vm390_vm1, %v851_v41 }
 0x375   :  { %v843_v45 = vpop.permute.xlu1 %842 }
 0x376   :  { %v852_v17 = vmul.f32 %v1330_v49, %v843_v45 }
 0x378   :  { %860 = vst.msk [vmem:[%s1512_s6 + $0x38] sm:$0xff] %vm390_vm1, %v852_v17 }
 0x379   :  { %1143 = dma.done.wait [#allocation3], 1024  }
 0x37a   :  { %1144 = vsyncadd [#allocation3], 4294966272 }
 0x37b   :  { %880 = vsyncpa [#allocation3], 1 }

</bundles_post_ra>
